<compile_context>
chip_gen: v7x
topology: tpu7x:2x2x1
jax: 0.10.0
libtpu: 0.0.40
codegen_flags: <defaults>
</compile_context>

<pallas_src>
import jax
import jax.numpy as jnp
from jax.experimental import pallas as pl
from jax.experimental.pallas import tpu as pltpu


def autoencoder_kernel(x_ref, w1_ref, b1_ref, w2_ref, b2_ref, out_ref):
    # Encoder: Linear(input_dim -> hidden_pad) + ReLU.
    # x arrives in its native dtype; cast to bf16 in-kernel (cheap VPU op per tile,
    # saves a separate XLA convert pass over x in HBM).
    x_bf = x_ref[...].astype(jnp.bfloat16)
    h = jnp.dot(x_bf, w1_ref[...], preferred_element_type=jnp.float32)
    h = jnp.maximum(h + b1_ref[...], 0.0)                 # f32 bias-add + ReLU (VPU)

    # Decoder: Linear(hidden_pad -> input_dim) + Sigmoid.
    y = jnp.dot(h.astype(jnp.bfloat16), w2_ref[...],
                preferred_element_type=jnp.float32)
    y = jax.nn.sigmoid(y + b2_ref[...])                   # f32 bias-add + sigmoid (EUP)

    out_ref[...] = y.astype(out_ref.dtype)


def _round_up(n, m):
    return ((n + m - 1) // m) * m


def autoencoder_forward(x, w1, b1, w2, b2, *, block_batch=1024, out_dtype=None):
    """x: (B, D); w1: (D, H); b1: (1, H); w2: (H, D); b2: (1, D).
    Weights are pre-transposed vs nn.Linear so the hot path is plain x @ W + b."""
    B, D = x.shape
    H = w1.shape[1]
    out_dtype = x.dtype if out_dtype is None else jnp.dtype(out_dtype)

    # --- Lane-dense hidden: zero-pad hidden dim to a multiple of 128. ---
    # Padded b1 entries are ZERO so ReLU(0 + 0) = 0 keeps padded hidden units inert,
    # and the padded W2 rows multiply those zeros -> identical math to unpadded.
    Hp = max(128, _round_up(H, 128))
    if Hp != H:
        w1 = jnp.pad(w1, ((0, 0), (0, Hp - H)))
        b1 = jnp.pad(b1, ((0, 0), (0, Hp - H)))
        w2 = jnp.pad(w2, ((0, Hp - H), (0, 0)))

    # --- Batch tile: multiple of 16 sublanes (bf16-safe); pad batch to whole tiles. ---
    TB = _round_up(min(block_batch, _round_up(B, 16)), 16)
    if B >= 32:
        # v7x megacore: keep >= 2 batch tiles so the "parallel" axis feeds both TCs.
        TB = min(TB, _round_up((B + 1) // 2, 16))
    TB = max(16, TB)
    Bp = _round_up(B, TB)
    if Bp != B:
        x = jnp.pad(x, ((0, Bp - B), (0, 0)))

    # --- bf16 weights at the MXU; biases + accumulation in f32. x stays native. ---
    w1_bf = w1.astype(jnp.bfloat16)
    w2_bf = w2.astype(jnp.bfloat16)
    b1_f32 = b1.astype(jnp.float32)
    b2_f32 = b2.astype(jnp.float32)

    grid = (Bp // TB,)

    # --- VMEM budget: resident weights/biases + double-buffered x/out tiles. ---
    x_item = jnp.dtype(x.dtype).itemsize
    o_item = jnp.dtype(out_dtype).itemsize
    footprint = (
        2 * (w1_bf.size + w2_bf.size) * 2            # bf16 weights (double-buffered)
        + 2 * (b1_f32.size + b2_f32.size) * 4        # f32 biases
        + 2 * TB * D * x_item                        # x tile (double-buffered)
        + 2 * TB * D * o_item                        # out tile (double-buffered)
    )
    try:
        phys_vmem = int(pltpu.get_tpu_info().vmem_capacity_bytes)
    except Exception:
        phys_vmem = 64 << 20                         # conservative (v7x per-TC)
    ceiling = int(phys_vmem * 3 // 4)                # ~48 MiB on v7x, ~96 MiB on v5e/v6e
    vmem_limit = min(ceiling, max(32 << 20, footprint + (4 << 20)))

    cost = pl.CostEstimate(
        flops=2 * 2 * Bp * D * Hp,                   # two matmuls
        transcendentals=Bp * D,                      # sigmoid
        bytes_accessed=(Bp * D * x_item              # x in (native dtype)
                        + Bp * D * o_item            # out
                        + (w1_bf.size + w2_bf.size) * 2   # resident bf16 weights
                        + (b1_f32.size + b2_f32.size) * 4),
    )

    # TODO(synk): if D*Hp grows so 2*D*Hp*2B of bf16 weights no longer fits v7x's
    # 64 MiB VMEM, add an Hp grid axis marked "arbitrary" with an f32 accumulator.
    out = pl.pallas_call(
        autoencoder_kernel,
        out_shape=jax.ShapeDtypeStruct((Bp, D), out_dtype),
        grid=grid,
        in_specs=[
            pl.BlockSpec((TB, D), lambda i: (i, 0)),     # x: streamed per batch tile
            pl.BlockSpec((D, Hp), lambda i: (0, 0)),     # W1: resident in VMEM
            pl.BlockSpec((1, Hp), lambda i: (0, 0)),     # b1: resident
            pl.BlockSpec((Hp, D), lambda i: (0, 0)),     # W2: resident
            pl.BlockSpec((1, D), lambda i: (0, 0)),      # b2: resident
        ],
        out_specs=pl.BlockSpec((TB, D), lambda i: (i, 0)),
        compiler_params=pltpu.CompilerParams(
            dimension_semantics=("parallel",),           # v7x: batch tiles over 2 TCs
            vmem_limit_bytes=vmem_limit,
        ),
        cost_estimate=cost,
    )(x, w1_bf, b1_f32, w2_bf, b2_f32)

    return out[:B]


def init_params(key, input_dim, hidden_dim, dtype=jnp.float32):
    """Deterministic init mimicking nn.Linear's U(-1/sqrt(fan_in), 1/sqrt(fan_in))."""
    k1, k2, k3, k4 = jax.random.split(key, 4)
    bound1 = 1.0 / jnp.sqrt(input_dim)
    bound2 = 1.0 / jnp.sqrt(hidden_dim)
    # Stored pre-transposed: (in_features, out_features)
    w1 = jax.random.uniform(k1, (input_dim, hidden_dim), dtype, -bound1, bound1)
    b1 = jax.random.uniform(k2, (1, hidden_dim), dtype, -bound1, bound1)
    w2 = jax.random.uniform(k3, (hidden_dim, input_dim), dtype, -bound2, bound2)
    b2 = jax.random.uniform(k4, (1, input_dim), dtype, -bound2, bound2)
    return w1, b1, w2, b2


def reference_forward(x, w1, b1, w2, b2):
    h = jnp.maximum(x @ w1 + b1, 0.0)
    return jax.nn.sigmoid(h @ w2 + b2)


if __name__ == "__main__":
    batch = 256          # with the 2-tile cap -> grid=(2,), exercises the batch pipeline
    input_dim = 128
    hidden_dim = 32      # padded to 128 inside the wrapper

    key = jax.random.PRNGKey(0)
    kx, kp = jax.random.split(key)
    x = jax.random.normal(kx, (batch, input_dim), dtype=jnp.float32)
    w1, b1, w2, b2 = init_params(kp, input_dim, hidden_dim)

    out = autoencoder_forward(x, w1, b1, w2, b2)
    out = jax.block_until_ready(out)

    ref = reference_forward(x, w1, b1, w2, b2)          # f32 reference
    assert out.shape == (batch, input_dim)
    # bf16 MXU inputs -> loosened tolerance vs the f32 reference.
    assert jnp.allclose(out, ref, atol=2e-2, rtol=2e-2), float(jnp.max(jnp.abs(out - ref)))

    print("KERNEL_OK")
</pallas_src>

<mosaic_0001>
module attributes {stable_mosaic.version = 11 : i64} {
  func.func @autoencoder_kernel(%arg0: i32, %arg1: memref<128x128xf32, #tpu.memory_space<vmem>>, %arg2: memref<128x128xbf16, #tpu.memory_space<vmem>>, %arg3: memref<1x128xf32, #tpu.memory_space<vmem>>, %arg4: memref<128x128xbf16, #tpu.memory_space<vmem>>, %arg5: memref<1x128xf32, #tpu.memory_space<vmem>>, %arg6: memref<128x128xf32, #tpu.memory_space<vmem>>) attributes {dimension_semantics = [#tpu.dimension_semantics<parallel>], iteration_bounds = array<i64: 2>, scalar_prefetch = 0 : i64, scratch_operands = 0 : i64, tpu.core_type = #tpu.core_type<tc>, window_params = [{transform_indices = @transform_0, window_bounds = array<i64: 128, 128>}, {pipeline_mode = #tpu.pipeline_mode<synchronous>, transform_indices = @transform_1, window_bounds = array<i64: 128, 128>}, {pipeline_mode = #tpu.pipeline_mode<synchronous>, transform_indices = @transform_2, window_bounds = array<i64: 1, 128>}, {pipeline_mode = #tpu.pipeline_mode<synchronous>, transform_indices = @transform_3, window_bounds = array<i64: 128, 128>}, {pipeline_mode = #tpu.pipeline_mode<synchronous>, transform_indices = @transform_4, window_bounds = array<i64: 1, 128>}, {transform_indices = @transform_5, window_bounds = array<i64: 128, 128>}]} {
    %c0 = arith.constant 0 : index
    %c0_0 = arith.constant 0 : index
    %0 = vector.load %arg1[%c0, %c0_0] : memref<128x128xf32, #tpu.memory_space<vmem>>, vector<128x128xf32>
    %1 = arith.truncf %0 : vector<128x128xf32> to vector<128x128xbf16>
    %c0_1 = arith.constant 0 : index
    %c0_2 = arith.constant 0 : index
    %2 = vector.load %arg2[%c0_1, %c0_2] : memref<128x128xbf16, #tpu.memory_space<vmem>>, vector<128x128xbf16>
    %cst = arith.constant dense<0.000000e+00> : vector<128x128xf32>
    %3 = tpu.matmul %1, %2, %cst {dimension_numbers = #tpu.dot_dimension_numbers<[1], [0], [0], [1], [0, 0, 1, 1], [], []>} : vector<128x128xbf16>, vector<128x128xbf16>, vector<128x128xf32> -> vector<128x128xf32>
    %c0_3 = arith.constant 0 : index
    %c0_4 = arith.constant 0 : index
    %4 = vector.load %arg3[%c0_3, %c0_4] : memref<1x128xf32, #tpu.memory_space<vmem>>, vector<1x128xf32>
    %5 = vector.broadcast %4 : vector<1x128xf32> to vector<128x128xf32>
    %6 = arith.addf %3, %5 : vector<128x128xf32>
    %cst_5 = arith.constant 0.000000e+00 : f32
    %7 = vector.broadcast %cst_5 : f32 to vector<128x128xf32>
    %8 = arith.maximumf %6, %7 : vector<128x128xf32>
    %9 = arith.truncf %8 : vector<128x128xf32> to vector<128x128xbf16>
    %c0_6 = arith.constant 0 : index
    %c0_7 = arith.constant 0 : index
    %10 = vector.load %arg4[%c0_6, %c0_7] : memref<128x128xbf16, #tpu.memory_space<vmem>>, vector<128x128xbf16>
    %cst_8 = arith.constant dense<0.000000e+00> : vector<128x128xf32>
    %11 = tpu.matmul %9, %10, %cst_8 {dimension_numbers = #tpu.dot_dimension_numbers<[1], [0], [0], [1], [0, 0, 1, 1], [], []>} : vector<128x128xbf16>, vector<128x128xbf16>, vector<128x128xf32> -> vector<128x128xf32>
    %c0_9 = arith.constant 0 : index
    %c0_10 = arith.constant 0 : index
    %12 = vector.load %arg5[%c0_9, %c0_10] : memref<1x128xf32, #tpu.memory_space<vmem>>, vector<1x128xf32>
    %13 = vector.broadcast %12 : vector<1x128xf32> to vector<128x128xf32>
    %14 = arith.addf %11, %13 : vector<128x128xf32>
    %15 = arith.negf %14 : vector<128x128xf32>
    %16 = math.exp %15 : vector<128x128xf32>
    %cst_11 = arith.constant 1.000000e+00 : f32
    %17 = vector.broadcast %cst_11 : f32 to vector<128x128xf32>
    %18 = arith.addf %17, %16 : vector<128x128xf32>
    %19 = arith.divf %17, %18 : vector<128x128xf32>
    %c0_12 = arith.constant 0 : index
    %c0_13 = arith.constant 0 : index
    %20 = vector.load %arg6[%c0_12, %c0_13] : memref<128x128xf32, #tpu.memory_space<vmem>>, vector<128x128xf32>
    tpu.vector_store %arg6[%c0_12, %c0_13], %19 {strides = array<i32>} : memref<128x128xf32, #tpu.memory_space<vmem>>, vector<128x128xf32>,
    return
  }
  func.func @transform_0(%arg0: i32) -> (i32, i32) {
    %c0_i32 = arith.constant 0 : i32
    %c0_i32_0 = arith.constant 0 : i32
    return %arg0, %c0_i32 : i32, i32
  }
  func.func @transform_1(%arg0: i32) -> (i32, i32) {
    %c0_i32 = arith.constant 0 : i32
    %c0_i32_0 = arith.constant 0 : i32
    %c0_i32_1 = arith.constant 0 : i32
    return %c0_i32, %c0_i32_0 : i32, i32
  }
  func.func @transform_2(%arg0: i32) -> (i32, i32) {
    %c0_i32 = arith.constant 0 : i32
    %c0_i32_0 = arith.constant 0 : i32
    %c0_i32_1 = arith.constant 0 : i32
    return %c0_i32, %c0_i32_0 : i32, i32
  }
  func.func @transform_3(%arg0: i32) -> (i32, i32) {
    %c0_i32 = arith.constant 0 : i32
    %c0_i32_0 = arith.constant 0 : i32
    %c0_i32_1 = arith.constant 0 : i32
    return %c0_i32, %c0_i32_0 : i32, i32
  }
  func.func @transform_4(%arg0: i32) -> (i32, i32) {
    %c0_i32 = arith.constant 0 : i32
    %c0_i32_0 = arith.constant 0 : i32
    %c0_i32_1 = arith.constant 0 : i32
    return %c0_i32, %c0_i32_0 : i32, i32
  }
  func.func @transform_5(%arg0: i32) -> (i32, i32) {
    %c0_i32 = arith.constant 0 : i32
    %c0_i32_0 = arith.constant 0 : i32
    return %arg0, %c0_i32 : i32, i32
  }
}

</mosaic_0001>

<bundles_post_ra>
// kernel: tpu_custom_call.1
= control target key start
LH: loop header
LB: loop body
LE: loop exit
PB: predicated region body
PF: predicated region fallthrough
CT: control target
= control target key end

     0   :  { %10 = vsyncpa [#allocation3], 0  ;;  %s1677_s0 = inlined_call_operand.hbm [shape: f32[256,128], index: 0, kind: input, shape index: {}]   ;;  %s1678_s1 = inlined_call_operand.hbm [shape: bf16[128,128], index: 1, kind: input, shape index: {}]   ;;  %s1679_s2 = inlined_call_operand.vmem [shape: f32[1,128], index: 2, kind: input, shape index: {}]   ;;  %s1680_s3 = inlined_call_operand.hbm [shape: bf16[128,128], index: 3, kind: input, shape index: {}]   ;;  %s1681_s4 = inlined_call_operand.vmem [shape: f32[1,128], index: 4, kind: input, shape index: {}]   ;;  %s1682_s5 = inlined_call_operand.hbm [shape: f32[256,128], index: 5, kind: output, shape index: {}]  }
   0x1   :  { %12 = vsyncpa [#allocation3 + $0x1], 0 }
   0x2   :  { %13 = vsyncpa [#allocation6], 0 }
   0x3   :  { %14 = vsyncpa [#allocation4], 0 }
   0x4   :  { %16 = vsyncpa [#allocation4 + $0x1], 0  ;;  %s1378_s18 = smov 0   ;;  %s1380_s19 = smov 0  }
   0x5   :  { %s1382_s20 = smov 0   ;;  %s1384_s21 = smov 0  }
   0x6 LB: > { %s1399_s22 = sadd.s32 4294967295, %s1336_s21   ;;  %s877_s23 = sadd.s32 4294967294, %s1336_s21   ;;  %s1336_s21 = sphi %s1384_s21, %s1702_s21   ;;  %s1332_s20 = sphi %s1382_s20, %s1701_s20   ;;  %s1328_s19 = sphi %s1380_s19, %s1700_s19   ;;  %s1324_s18 = sphi %s1378_s18, %s1699_s18  }
   0x7   : > { %p42_p0 = scmp.ne.s32.totalorder %s1328_s19, %s1324_s18  ;;  %p1683_p1 = scmp.eq.s32.totalorder %s1399_s22, 0 }
   0x8   : > { %p156_p3 = scmp.eq.s32.totalorder %s877_s23, 1  ;;  %p878_p5 = scmp.ge.s32.totalorder %s1336_s21, 1 }
   0x9   : > { %p1408_p4 = por %p1683_p1, %p42_p0  ;;  %p163_p7 = scmp.lt.s32.totalorder %s1336_s21, 3 }
   0xa   : > { %p1413_p6 = por %p156_p3, %p42_p0  ;;  %s1338_s27 = smov [#allocation5]  }
   0xb   : > { %s1686_s24 = scalar_select %p1408_p4, 1, 0 }
   0xc   : > { %s1687_s25 = scalar_select %p1413_p6, 1, 0 }
   0xd   : > { %p1418_p8 = pnand %p878_p5, %p163_p7  ;;  %s175_s28 = sshll.u32 %s1338_s27, 4  ;;  %s1422_s28 = int_to_ptr.vmem [resolvable:$true] %s175_s28 }
   0xe   : > { %s1339_s30 = smov [#allocation7]   ;;  %s1180_s9 = scalar_lea.hbm %s1678_s1, 1024 }
   0xf   : > { %p1039_p9 = pneg %p1418_p8  ;;  %s191_s6 = sshll.u32 %s1339_s30, 4  ;;  %s1433_s6 = int_to_ptr.vmem [resolvable:$true] %s191_s6 }
  0x10   : > { %p1181_p12 = scmp.ne.s32.totalorder %s1678_s1, %s1180_s9  ;;  %p1187_p5 = scmp.lt.u32.totalorder %s1180_s9, %s1678_s1 }
  0x11   : > { %p1429_p11 = pnand %p1039_p9, %p1683_p1 }
  0x13   : > { %p1182_p13 = pneg %p1429_p11 }
  0x15   : > { %p1183_p0 = pnand %p1182_p13, %p1181_p12 }
  0x17   : > { %p1184_p3 = pneg %p1183_p0 }
  0x19   : > { %p1189_p7 = pnand %p1187_p5, %p1184_p3 }
  0x1b   : > { %1192 = shalt.err (!%p1189_p7)
}
  0x1c   : > { %s1193_s14 = scalar_lea.vmem %s1422_s28, 1024  ;;  %p1201_p2 = scmp.lt.s32.totalorder %s1422_s28, %s1422_s28 }
  0x1d   : > { %p1194_p9 = scmp.ne.s32.totalorder %s1422_s28, %s1193_s14  ;;  %p1202_p12 = scmp.lt.s32.totalorder %s1193_s14, %s1193_s14 }
  0x1f   : > { %p1196_p10 = pnand %p1194_p9, %p1182_p13  ;;  %p1203_p0 = por %p1202_p12, %p1201_p2 }
  0x21   : > { %p1197_p1 = pneg %p1196_p10 }
  0x23   : > { %p1204_p6 = pnand %p1203_p0, %p1197_p1 }
  0x25   : > { %1207 = shalt.err (!%p1204_p6)
}
  0x26   : > { %s1340_s15 = smov 64   ;;  %s1341_s16 = smov 4  }
  0x27   : > { %1042 = dma.hbm_to_vmem [thread:$0]  (!%p1429_p11), %s1678_s1, 1024, %s1422_s28, [#allocation6], %s1340_s15, %s1340_s15, %s1341_s16  }
  0x28   : > { %s1208_s7 = scalar_lea.hbm %s1680_s3, 1024 }
  0x29   : > { %p1209_p2 = scmp.ne.s32.totalorder %s1680_s3, %s1208_s7  ;;  %p1215_p10 = scmp.lt.u32.totalorder %s1208_s7, %s1680_s3 }
  0x2b   : > { %p1211_p1 = pnand %p1209_p2, %p1182_p13 }
  0x2d   : > { %p1212_p6 = pneg %p1211_p1 }
  0x2f   : > { %p1217_p3 = pnand %p1215_p10, %p1212_p6 }
  0x31   : > { %1220 = shalt.err (!%p1217_p3)
}
  0x32   : > { %s1221_s28 = scalar_lea.vmem %s1433_s6, 1024  ;;  %p1229_p12 = scmp.lt.s32.totalorder %s1433_s6, %s1433_s6 }
  0x33   : > { %p1222_p5 = scmp.ne.s32.totalorder %s1433_s6, %s1221_s28  ;;  %p1230_p0 = scmp.lt.s32.totalorder %s1221_s28, %s1221_s28 }
  0x35   : > { %p1224_p7 = pnand %p1222_p5, %p1182_p13  ;;  %p1231_p2 = por %p1230_p0, %p1229_p12 }
  0x37   : > { %p1225_p9 = pneg %p1224_p7 }
  0x39   : > { %p1232_p1 = pnand %p1231_p2, %p1225_p9 }
  0x3b   : > { %1235 = shalt.err (!%p1232_p1)
}
  0x3c   : > { %1045 = dma.hbm_to_vmem [thread:$0]  (!%p1429_p11), %s1680_s3, 1024, %s1433_s6, [#allocation6], %s1340_s15, %s1340_s15, %s1341_s16  }
  0x3d   : > { %s1488_s14 = sadd.s32 1, %s1336_s21   ;;  %s29_s29 = sadd.s32 1, %s1332_s20 }
  0x3e   : > { %s26_s17 = ssub.s32 %s1336_s21, %s1488_s14  ;;  %p36_p13 = scmp.ne.s32.totalorder %s1332_s20, %s1328_s19 }
  0x3f   : > { %p27_p6 = scmp.eq.s32.totalorder %s26_s17, 0  ;;  %p37_p10 = scmp.eq.s32.totalorder %s1336_s21, 0 }
  0x40   : > { %p1690_p3 = scmp.eq.s32.totalorder %s1399_s22, 1  ;;  %p1056_p7 = scmp.lt.s32.totalorder %s1336_s21, 2 }
  0x41   : > { %s1504_s27 = scalar_select %p27_p6, %s1332_s20, %s29_s29  }
  0x42   : > { %p1498_p5 = por %p1690_p3, %p36_p13  ;;  %p38_p9 = por %p37_p10, %p36_p13 }
  0x43   : > { %s208_s30 = sand.u32 1, %s1332_s20   ;;  %s929_s6 = sshll.u32 %s1336_s21, 11 }
  0x44   : > { %s1691_s23 = scalar_select %p1498_p5, 1, 0 }
  0x45   : > { %s882_s7 = sshll.u32 %s208_s30, 7  ;;  %s1511_s8 = scalar_lea.hbm %s1677_s0, %s929_s6 }
  0x46   : > { %s212_s9 = scalar_lea.vmem [#allocation2], %s882_s7  ;;  %p1515_p11 = pnand %p1056_p7, %p38_p9 }
  0x47   : > { %s219_s10 = sshll.u32 %s212_s9, 4  ;;  %s1519_s28 = scalar_lea.sflag [#allocation3], %s208_s30  ;;  %s1513_s10 = int_to_ptr.vmem [resolvable:$true] %s219_s10 }
  0x48   : > { %s1236_s12 = scalar_lea.hbm %s1511_s8, 2048  ;;  %p1238_p0 = pneg %p1515_p11 }
  0x49   : > { %p1237_p12 = scmp.ne.s32.totalorder %s1511_s8, %s1236_s12  ;;  %s1241_s17 = scalar_lea.hbm %s1677_s0, 4096 }
  0x4a   : > { %p1242_p13 = scmp.lt.u32.totalorder %s1511_s8, %s1677_s0  ;;  %p1243_p6 = scmp.lt.u32.totalorder %s1241_s17, %s1236_s12 }
  0x4b   : > { %p1239_p2 = pnand %p1238_p0, %p1237_p12  ;;  %p1245_p3 = scmp.lt.u32.totalorder %s1236_s12, %s1511_s8 }
  0x4c   : > { %p1244_p10 = por %p1243_p6, %p1242_p13 }
  0x4d   : > { %p1240_p1 = pneg %p1239_p2 }
  0x4e   : > { %p1246_p7 = por %p1245_p3, %p1244_p10 }
  0x50   : > { %p1247_p9 = pnand %p1246_p7, %p1240_p1 }
  0x52   : > { %1250 = shalt.err (!%p1247_p9)
}
  0x53   : > { %s1251_s30 = scalar_lea.vmem %s1513_s10, 2048  ;;  %s1342_s15 = smov [#allocation2]  }
  0x54   : > { %p1252_p12 = scmp.ne.s32.totalorder %s1513_s10, %s1251_s30  ;;  %s1256_s16 = sshll.u32 %s1342_s15, 4  ;;  %s1257_s16 = int_to_ptr.vmem [resolvable:$false] %s1256_s16 }
  0x55   : > { %s1258_s9 = scalar_lea.vmem %s1257_s16, 4096  ;;  %p1259_p4 = scmp.lt.s32.totalorder %s1513_s10, %s1257_s16 }
  0x56   : > { %p1254_p2 = pnand %p1252_p12, %p1238_p0  ;;  %p1260_p13 = scmp.lt.s32.totalorder %s1258_s9, %s1251_s30 }
  0x58   : > { %p1255_p5 = pneg %p1254_p2  ;;  %p1261_p6 = por %p1260_p13, %p1259_p4 }
  0x5a   : > { %p1262_p10 = pnand %p1261_p6, %p1255_p5 }
  0x5c   : > { %1265 = shalt.err (!%p1262_p10)
}
  0x5d   : > { %s1343_s12 = smov 128   ;;  %s1344_s13 = smov 8  }
  0x5e   : > { %1049 = dma.hbm_to_vmem [thread:$0]  (!%p1515_p11), %s1511_s8, 2048, %s1513_s10, %s1519_s28, %s1343_s12, %s1343_s12, %s1344_s13  }
  0x5f   : > { %231 = sbr.rel (%p1418_p8) target bundleno = 644 (0x284), region = 40  ;;  %s1550_s29 = sand.u32 (!%p1418_p8), 1, %s1328_s19  }
  0x60   : > { %s886_s17 = sshll.u32 (!%p1418_p8), %s1550_s29, 7  ;;  %s234_s7 = scalar_lea.sflag (!%p1418_p8), [#allocation3], %s1550_s29 }
  0x61   : > { %s1556_s6 = scalar_lea.vmem (!%p1418_p8), [#allocation2], %s886_s17  ;;  %p1693_p4 = scmp.ne.s32.totalorder (!%p1418_p8), %s1686_s24, 0 }
  0x66   : > { %1311 = dma.done.wait (%p1693_p4), %s234_s7, 2048  }
  0x67   : > { %1313 = vsyncadd (%p1693_p4), %s234_s7, 4294965248  ;;  %p1694_p5 = scmp.eq.s32.totalorder %s1399_s22, 0 }
  0x69   : > { %1315 = dma.done.wait (%p1694_p5), [#allocation6], 2048   ;;  %p1695_p8 = pmov %p1694_p5 }
  0x6a   : > { %v1100_v0 = vld [vmem:[#allocation5] sm:$0xff]   ;;  %v1101_v1 = vld [vmem:[#allocation5 + $0x8] sm:$0xff]   ;;  %v1102_v2 = vld [vmem:[#allocation5 + $0x10] sm:$0xff]   ;;  %s1608_s11 = scalar_lea.vmem [#allocation8], %s886_s17  ;;  %s930_s28 = sshll.u32 %s1399_s22, 11 }
  0x6b   : > { %1317 = vsyncadd (%p1695_p8), [#allocation6], 4294965248  ;;  %963 = vmatprep.subr.bf16.mxu0 %v1100_v0  ;;  %v1103_v3 = vld [vmem:[#allocation5 + $0x18] sm:$0xff]   ;;  %v275_v4 = vld [vmem:[%s1556_s6] sm:$0xff]  ;;  %s785_s30 = sshll.u32 %s1608_s11, 4  ;;  %s1628_s9 = scalar_lea.hbm %s1682_s5, %s930_s28  ;;  %s1630_s30 = int_to_ptr.vmem [resolvable:$true] %s785_s30 }
  0x6c   : > { %964 = vmatpush3.bf16.msra.mxu0 %v1100_v0  ;;  %v276_v5 = vld [vmem:[%s1556_s6 + $0x8] sm:$0xff]  ;;  %v1104_v7 = vld [vmem:[#allocation5 + $0x20] sm:$0xff]   ;;  %v1110_v11 = vld [vmem:[#allocation7 + $0x10] sm:$0xff]   ;;  %s772_s22 = scalar_lea.sflag [#allocation4], %s1550_s29  ;;  %s1266_s12 = scalar_lea.vmem %s1630_s30, 2048 }
  0x6d   : > { %965 = vmatprep.subr.bf16.mxu0 %v1101_v1  ;;  %v291_v6 = vpack.c.bf16 %v276_v5, %v275_v4  ;;  %v1108_v8 = vld [vmem:[#allocation7] sm:$0xff]   ;;  %v1109_v9 = vld [vmem:[#allocation7 + $0x8] sm:$0xff]   ;;  %v1106_v12 = vld [vmem:[#allocation5 + $0x30] sm:$0xff]   ;;  %p1267_p11 = scmp.ne.s32.totalorder %s1630_s30, %s1266_s12  ;;  %p1696_p0 = scmp.ne.s32.totalorder %s1691_s23, 0 }
  0x6e   : > { %v1105_v10 = vld [vmem:[#allocation5 + $0x28] sm:$0xff]   ;;  %995 = vmatprep.subr.bf16.mxu1 %v1108_v8  ;;  %v1111_v13 = vld [vmem:[#allocation7 + $0x18] sm:$0xff]   ;;  %v1112_v15 = vld [vmem:[#allocation7 + $0x20] sm:$0xff]   ;;  %s1345_s13 = smov [#allocation8]  }
  0x6f   : > { %979 = vmatprep.mubr.bf16.mxu0 %v291_v6  ;;  %996 = vmatpush3.bf16.msra.mxu1 %v1108_v8  ;;  %v1107_v14 = vld [vmem:[#allocation5 + $0x38] sm:$0xff]   ;;  %v277_v16 = vld [vmem:[%s1556_s6 + $0x10] sm:$0xff]  ;;  %v279_v18 = vld [vmem:[%s1556_s6 + $0x20] sm:$0xff]  ;;  %p1268_p1 = pnand %p1267_p11, %p1696_p0  ;;  %s1270_s17 = sshll.u32 %s1345_s13, 4  ;;  %s1271_s17 = int_to_ptr.vmem [resolvable:$false] %s1270_s17 }
  0x70   : > { %966 = vmatpush3.bf16.msra.mxu0 %v1101_v1  ;;  %997 = vmatprep.subr.bf16.mxu1 %v1109_v9  ;;  %v278_v17 = vld [vmem:[%s1556_s6 + $0x18] sm:$0xff]  ;;  %v280_v19 = vld [vmem:[%s1556_s6 + $0x28] sm:$0xff]  ;;  %v281_v23 = vld [vmem:[%s1556_s6 + $0x30] sm:$0xff]  ;;  %s1272_s7 = scalar_lea.vmem %s1271_s17, 4096  ;;  %p1273_p7 = scmp.lt.s32.totalorder %s1630_s30, %s1271_s17 }
  0x71   : > { %967 = vmatprep.subr.bf16.mxu0 %v1102_v2  ;;  %v292_v20 = vpack.c.bf16 %v278_v17, %v277_v16  ;;  %v1113_v21 = vld [vmem:[#allocation7 + $0x28] sm:$0xff]   ;;  %v293_v22 = vpack.c.bf16 %v280_v19, %v279_v18  ;;  %v282_v24 = vld [vmem:[%s1556_s6 + $0x38] sm:$0xff]  ;;  %v283_v25 = vld [vmem:[%s1556_s6 + $0x40] sm:$0xff]  ;;  %p1269_p3 = pneg %p1268_p1  ;;  %p1274_p9 = scmp.lt.s32.totalorder %s1272_s7, %s1266_s12 }
  0x72   : > { %v284_v26 = vld [vmem:[%s1556_s6 + $0x48] sm:$0xff]  ;;  %v294_v27 = vpack.c.bf16 %v282_v24, %v281_v23  ;;  %v285_v29 = vld [vmem:[%s1556_s6 + $0x50] sm:$0xff]  ;;  %v286_v30 = vld [vmem:[%s1556_s6 + $0x58] sm:$0xff] }
  0x73   : > { %998 = vmatpush3.bf16.msra.mxu1 %v1109_v9  ;;  %v295_v28 = vpack.c.bf16 %v284_v26, %v283_v25  ;;  %v287_v31 = vld [vmem:[%s1556_s6 + $0x60] sm:$0xff]  ;;  %v288_v32 = vld [vmem:[%s1556_s6 + $0x68] sm:$0xff]  ;;  %v296_v33 = vpack.c.bf16 %v286_v30, %v285_v29  ;;  %v289_v35 = vld [vmem:[%s1556_s6 + $0x70] sm:$0xff]  ;;  %p1275_p12 = por %p1274_p9, %p1273_p7 }
  0x74   : > { %968 = vmatpush3.bf16.msra.mxu0 %v1102_v2  ;;  %999 = vmatprep.subr.bf16.mxu1 %v1110_v11  ;;  %v297_v34 = vpack.c.bf16 %v288_v32, %v287_v31  ;;  %v290_v36 = vld [vmem:[%s1556_s6 + $0x78] sm:$0xff]  ;;  %v1114_v38 = vld [vmem:[#allocation7 + $0x30] sm:$0xff]   ;;  %v890_v40 = vld [vmem:[%s1679_s2] ss:$0 sm:$0xff] }
  0x75   : > { %969 = vmatprep.subr.bf16.mxu0 %v1103_v3  ;;  %v298_v37 = vpack.c.bf16 %v290_v36, %v289_v35  ;;  %v1115_v39 = vld [vmem:[#allocation7 + $0x38] sm:$0xff]   ;;  %p1276_p2 = pnand %p1275_p12, %p1269_p3 }
  0x77   : > { %1000 = vmatpush3.bf16.msra.mxu1 %v1110_v11 }
  0x78   : > { %970 = vmatpush3.bf16.msra.mxu0 %v1103_v3  ;;  %1001 = vmatprep.subr.bf16.mxu1 %v1111_v13 }
  0x79   : > { %971 = vmatprep.subr.bf16.mxu0 %v1104_v7 }
  0x7b   : > { %1002 = vmatpush3.bf16.msra.mxu1 %v1111_v13 }
  0x7c   : > { %972 = vmatpush3.bf16.msra.mxu0 %v1104_v7  ;;  %1003 = vmatprep.subr.bf16.mxu1 %v1112_v15 }
  0x7d   : > { %973 = vmatprep.subr.bf16.mxu0 %v1105_v10 }
  0x7f   : > { %1004 = vmatpush3.bf16.msra.mxu1 %v1112_v15 }
  0x80   : > { %974 = vmatpush3.bf16.msra.mxu0 %v1105_v10  ;;  %1005 = vmatprep.subr.bf16.mxu1 %v1113_v21 }
  0x81   : > { %975 = vmatprep.subr.bf16.mxu0 %v1106_v12 }
  0x83   : > { %1006 = vmatpush3.bf16.msra.mxu1 %v1113_v21 }
  0x84   : > { %976 = vmatpush3.bf16.msra.mxu0 %v1106_v12  ;;  %1007 = vmatprep.subr.bf16.mxu1 %v1114_v38 }
  0x85   : > { %977 = vmatprep.subr.bf16.mxu0 %v1107_v14 }
  0x87   : > { %1008 = vmatpush3.bf16.msra.mxu1 %v1114_v38 }
  0x88   : > { %978 = vmatpush3.bf16.msra.mxu0 %v1107_v14  ;;  %1009 = vmatprep.subr.bf16.mxu1 %v1115_v39 }
  0x8b   : > { %980 = vmatmul.mubr.bf16.vlgmr.msra.gmra.mrb[0].mxu0 %v292_v20  ;;  %1010 = vmatpush3.bf16.msra.mxu1 %v1115_v39 }
  0x8c   : > { %983 = vmatprep.mubr.bf16.mxu0 %v293_v22 }
  0x93   : > { %984 = vmatmul.mubr.bf16.gmra.mrb[4].mxu0 %v294_v27 }
  0x94   : > { %987 = vmatprep.mubr.bf16.mxu0 %v295_v28 }
  0x9b   : > { %988 = vmatmul.mubr.bf16.gmra.mrb[8].mxu0 %v296_v33  ;;  %v1588_v33 = vld [vmem:[%s1681_s4] ss:$0 sm:$0xff] }
  0x9c   : > { %991 = vmatprep.mubr.bf16.mxu0 %v297_v34 }
  0xa3   : > { %992 = vmatmul.mubr.bf16.gmra.mrb[12].mxu0 %v298_v37 }
 0x15e   : > { %v981_v41 = vpop.f32.mrb[0].mxu0 }
 0x15f   : > { %v413_v42 = vadd.f32 %v981_v41, %v890_v40  ;;  %v404_v43 = vpop.f32.mrb[1].mxu0 }
 0x160   : > { %v405_v44 = vadd.f32 %v890_v40, %v404_v43  ;;  %v982_v45 = vpop.f32.mrb[2].mxu0 }
 0x161   : > { %v416_v46 = vadd.f32 %v982_v45, %v890_v40  ;;  %v407_v47 = vpop.f32.mrb[3].mxu0  ;;  %v469_v49 = vmax.f32 %v413_v42, 0.0 }
 0x162   : > { %v408_v48 = vadd.f32 %v890_v40, %v407_v47  ;;  %v467_v51 = vmax.f32 %v405_v44, 0.0 }
 0x163   : > { %v470_v50 = vmax.f32 %v416_v46, 0.0 }
 0x164   : > { %v468_v52 = vmax.f32 %v408_v48, 0.0 }
 0x165   : > { %v484_v53 = vpack.c.bf16 %v470_v50, %v469_v49 }
 0x166   : > { %v985_v54 = vpop.f32.mrb[4].mxu0  ;;  %v483_v55 = vpack.c.bf16 %v468_v52, %v467_v51 }
 0x167   : > { %v429_v56 = vadd.f32 %v985_v54, %v890_v40  ;;  %v420_v57 = vpop.f32.mrb[5].mxu0 }
 0x168   : > { %v421_v58 = vadd.f32 %v890_v40, %v420_v57  ;;  %v986_v59 = vpop.f32.mrb[6].mxu0  ;;  %1011 = vmatprep.mubr.bf16.mxu1 %v483_v55 }
 0x169   : > { %v432_v60 = vadd.f32 %v986_v59, %v890_v40  ;;  %v423_v61 = vpop.f32.mrb[7].mxu0  ;;  %1012 = vmatmul.mubr.bf16.vlgmr.msra.gmra.mrb[0].mxu1 %v484_v53  ;;  %v473_v63 = vmax.f32 %v429_v56, 0.0 }
 0x16a   : > { %v424_v62 = vadd.f32 %v890_v40, %v423_v61  ;;  %v471_v1 = vmax.f32 %v421_v58, 0.0 }
 0x16b   : > { %v474_v0 = vmax.f32 %v432_v60, 0.0 }
 0x16c   : > { %v472_v2 = vmax.f32 %v424_v62, 0.0 }
 0x16d   : > { %v486_v3 = vpack.c.bf16 %v474_v0, %v473_v63 }
 0x16e   : > { %v485_v4 = vpack.c.bf16 %v472_v2, %v471_v1  ;;  %v989_v5 = vpop.f32.mrb[8].mxu0 }
 0x16f   : > { %v445_v6 = vadd.f32 %v989_v5, %v890_v40  ;;  %v436_v7 = vpop.f32.mrb[9].mxu0 }
 0x170   : > { %v437_v8 = vadd.f32 %v890_v40, %v436_v7  ;;  %v990_v9 = vpop.f32.mrb[10].mxu0  ;;  %1015 = vmatprep.mubr.bf16.mxu1 %v485_v4 }
 0x171   : > { %v448_v10 = vadd.f32 %v990_v9, %v890_v40  ;;  %v439_v11 = vpop.f32.mrb[11].mxu0  ;;  %1016 = vmatmul.mubr.bf16.gmra.mrb[4].mxu1 %v486_v3  ;;  %v477_v13 = vmax.f32 %v445_v6, 0.0 }
 0x172   : > { %v440_v12 = vadd.f32 %v890_v40, %v439_v11  ;;  %v475_v15 = vmax.f32 %v437_v8, 0.0 }
 0x173   : > { %v478_v14 = vmax.f32 %v448_v10, 0.0 }
 0x174   : > { %v476_v16 = vmax.f32 %v440_v12, 0.0 }
 0x175   : > { %v488_v17 = vpack.c.bf16 %v478_v14, %v477_v13 }
 0x176   : > { %v487_v18 = vpack.c.bf16 %v476_v16, %v475_v15  ;;  %v993_v19 = vpop.f32.mrb[12].mxu0 }
 0x177   : > { %v461_v20 = vadd.f32 %v993_v19, %v890_v40  ;;  %v452_v21 = vpop.f32.mrb[13].mxu0 }
 0x178   : > { %v453_v22 = vadd.f32 %v890_v40, %v452_v21  ;;  %v994_v23 = vpop.f32.mrb[14].mxu0  ;;  %1019 = vmatprep.mubr.bf16.mxu1 %v487_v18 }
 0x179   : > { %v464_v24 = vadd.f32 %v994_v23, %v890_v40  ;;  %v455_v25 = vpop.f32.mrb[15].mxu0  ;;  %1020 = vmatmul.mubr.bf16.gmra.mrb[8].mxu1 %v488_v17  ;;  %v481_v27 = vmax.f32 %v461_v20, 0.0 }
 0x17a   : > { %v456_v26 = vadd.f32 %v890_v40, %v455_v25  ;;  %v479_v29 = vmax.f32 %v453_v22, 0.0 }
 0x17b   : > { %v482_v28 = vmax.f32 %v464_v24, 0.0 }
 0x17c   : > { %v480_v30 = vmax.f32 %v456_v26, 0.0 }
 0x17d   : > { %v490_v31 = vpack.c.bf16 %v482_v28, %v481_v27 }
 0x17e   : > { %v489_v32 = vpack.c.bf16 %v480_v30, %v479_v29 }
 0x180   : > { %1023 = vmatprep.mubr.bf16.mxu1 %v489_v32 }
 0x181   : > { %1024 = vmatmul.mubr.bf16.gmra.mrb[12].mxu1 %v490_v31 }
 0x23c   : > { %v1013_v34 = vpop.f32.mrb[0].mxu1 }
 0x23d   : > { %v605_v35 = vadd.f32 %v1013_v34, %v1588_v33  ;;  %v596_v36 = vpop.f32.mrb[1].mxu1 }
 0x23e   : > { %v597_v37 = vadd.f32 %v1588_v33, %v596_v36  ;;  %v1014_v38 = vpop.f32.mrb[2].mxu1 }
 0x23f   : > { %v910_v39 = vmul.f32 -1.442695, %v605_v35  ;;  %v608_v40 = vadd.f32 %v1014_v38, %v1588_v33  ;;  %v599_v41 = vpop.f32.mrb[3].mxu1 }
 0x240   : > { %v908_v42 = vmul.f32 -1.442695, %v597_v37  ;;  %v600_v43 = vadd.f32 %v1588_v33, %v599_v41 }
 0x241   : > { %1116 = vpow2.f32 %v910_v39  ;;  %v911_v44 = vmul.f32 -1.442695, %v608_v40 }
 0x242   : > { %1118 = vpow2.f32 %v908_v42  ;;  %v909_v45 = vmul.f32 -1.442695, %v600_v43 }
 0x243   : > { %1120 = vpow2.f32 %v911_v44 }
 0x244   : > { %1122 = vpow2.f32 %v909_v45  ;;  %v1017_v46 = vpop.f32.mrb[4].mxu1 }
 0x245   : > { %v621_v47 = vadd.f32 %v1017_v46, %v1588_v33  ;;  %v612_v48 = vpop.f32.mrb[5].mxu1 }
 0x246   : > { %v613_v49 = vadd.f32 %v1588_v33, %v612_v48  ;;  %v1018_v50 = vpop.f32.mrb[6].mxu1 }
 0x247   : > { %v914_v51 = vmul.f32 -1.442695, %v621_v47  ;;  %v624_v52 = vadd.f32 %v1018_v50, %v1588_v33  ;;  %v615_v53 = vpop.f32.mrb[7].mxu1 }
 0x248   : > { %v912_v54 = vmul.f32 -1.442695, %v613_v49  ;;  %v616_v55 = vadd.f32 %v1588_v33, %v615_v53 }
 0x249   : > { %1124 = vpow2.f32 %v914_v51  ;;  %v915_v56 = vmul.f32 -1.442695, %v624_v52 }
 0x24a   : > { %1126 = vpow2.f32 %v912_v54  ;;  %v913_v57 = vmul.f32 -1.442695, %v616_v55 }
 0x24b   : > { %v1117_v58 = vpop.eup %1116  ;;  %1128 = vpow2.f32 %v915_v56 }
 0x24c   : > { %v1119_v59 = vpop.eup %1118  ;;  %v709_v60 = vadd.f32 1.0, %v1117_v58  ;;  %1130 = vpow2.f32 %v913_v57  ;;  %v1021_v61 = vpop.f32.mrb[8].mxu1 }
 0x24d   : > { %v1121_v62 = vpop.eup %1120  ;;  %v707_v63 = vadd.f32 1.0, %v1119_v59  ;;  %v637_v0 = vadd.f32 %v1021_v61, %v1588_v33  ;;  %v628_v1 = vpop.f32.mrb[9].mxu1 }
 0x24e   : > { %v1123_v2 = vpop.eup %1122  ;;  %1132 = vrcp.f32 %v709_v60  ;;  %v710_v3 = vadd.f32 1.0, %v1121_v62  ;;  %v629_v4 = vadd.f32 %v1588_v33, %v628_v1  ;;  %v1022_v5 = vpop.f32.mrb[10].mxu1 }
 0x24f   : > { %1134 = vrcp.f32 %v707_v63  ;;  %v708_v6 = vadd.f32 1.0, %v1123_v2  ;;  %v918_v7 = vmul.f32 -1.442695, %v637_v0  ;;  %v640_v8 = vadd.f32 %v1022_v5, %v1588_v33  ;;  %v631_v9 = vpop.f32.mrb[11].mxu1 }
 0x250   : > { %1136 = vrcp.f32 %v710_v3  ;;  %v916_v10 = vmul.f32 -1.442695, %v629_v4  ;;  %v632_v11 = vadd.f32 %v1588_v33, %v631_v9 }
 0x251   : > { %1138 = vrcp.f32 %v708_v6  ;;  %v919_v12 = vmul.f32 -1.442695, %v640_v8 }
 0x252   : > { %1140 = vpow2.f32 %v918_v7  ;;  %v917_v13 = vmul.f32 -1.442695, %v632_v11 }
 0x253   : > { %v1125_v14 = vpop.eup %1124  ;;  %1142 = vpow2.f32 %v916_v10 }
 0x254   : > { %v1127_v15 = vpop.eup %1126  ;;  %v713_v16 = vadd.f32 1.0, %v1125_v14  ;;  %1144 = vpow2.f32 %v919_v12  ;;  %v1025_v17 = vpop.f32.mrb[12].mxu1 }
 0x255   : > { %v1129_v18 = vpop.eup %1128  ;;  %v711_v19 = vadd.f32 1.0, %v1127_v15  ;;  %1146 = vpow2.f32 %v917_v13  ;;  %v653_v20 = vadd.f32 %v1025_v17, %v1588_v33  ;;  %v644_v21 = vpop.f32.mrb[13].mxu1 }
 0x256   : > { %v1131_v22 = vpop.eup %1130  ;;  %1148 = vrcp.f32 %v713_v16  ;;  %v714_v23 = vadd.f32 1.0, %v1129_v18  ;;  %v645_v24 = vadd.f32 %v1588_v33, %v644_v21  ;;  %v1026_v25 = vpop.f32.mrb[14].mxu1 }
 0x257   : > { %1150 = vrcp.f32 %v711_v19  ;;  %v712_v26 = vadd.f32 1.0, %v1131_v22  ;;  %v922_v27 = vmul.f32 -1.442695, %v653_v20  ;;  %v656_v28 = vadd.f32 %v1026_v25, %v1588_v33  ;;  %v647_v29 = vpop.f32.mrb[15].mxu1 }
 0x258   : > { %v1133_v30 = vpop.eup %1132  ;;  %1152 = vrcp.f32 %v714_v23  ;;  %v920_v31 = vmul.f32 -1.442695, %v645_v24  ;;  %v648_v32 = vadd.f32 %v1588_v33, %v647_v29 }
 0x259   : > { %v1135_v34 = vpop.eup %1134  ;;  %757 = vst [vmem:[%s1608_s11 + $0x10] sm:$0xff] %v1133_v30  ;;  %1154 = vrcp.f32 %v712_v26  ;;  %v923_v35 = vmul.f32 -1.442695, %v656_v28 }
 0x25a   : > { %v1137_v36 = vpop.eup %1136  ;;  %755 = vst [vmem:[%s1608_s11] sm:$0xff] %v1135_v34  ;;  %1156 = vpow2.f32 %v922_v27  ;;  %v921_v37 = vmul.f32 -1.442695, %v648_v32 }
 0x25b   : > { %v1139_v38 = vpop.eup %1138  ;;  %758 = vst [vmem:[%s1608_s11 + $0x18] sm:$0xff] %v1137_v36  ;;  %1158 = vpow2.f32 %v920_v31 }
 0x25c   : > { %v1141_v33 = vpop.eup %1140  ;;  %756 = vst [vmem:[%s1608_s11 + $0x8] sm:$0xff] %v1139_v38  ;;  %1160 = vpow2.f32 %v923_v35 }
 0x25d   : > { %v1143_v39 = vpop.eup %1142  ;;  %v717_v40 = vadd.f32 1.0, %v1141_v33  ;;  %1162 = vpow2.f32 %v921_v37 }
 0x25e   : > { %v1145_v41 = vpop.eup %1144  ;;  %v715_v42 = vadd.f32 1.0, %v1143_v39 }
 0x25f   : > { %v1147_v43 = vpop.eup %1146  ;;  %1164 = vrcp.f32 %v717_v40  ;;  %v718_v44 = vadd.f32 1.0, %v1145_v41 }
 0x260   : > { %v1149_v45 = vpop.eup %1148  ;;  %1166 = vrcp.f32 %v715_v42  ;;  %v716_v46 = vadd.f32 1.0, %v1147_v43 }
 0x261   : > { %v1151_v47 = vpop.eup %1150  ;;  %761 = vst [vmem:[%s1608_s11 + $0x30] sm:$0xff] %v1149_v45  ;;  %1168 = vrcp.f32 %v718_v44 }
 0x262   : > { %v1153_v48 = vpop.eup %1152  ;;  %759 = vst [vmem:[%s1608_s11 + $0x20] sm:$0xff] %v1151_v47  ;;  %1170 = vrcp.f32 %v716_v46 }
 0x263   : > { %v1155_v49 = vpop.eup %1154  ;;  %762 = vst [vmem:[%s1608_s11 + $0x38] sm:$0xff] %v1153_v48 }
 0x264   : > { %v1157_v50 = vpop.eup %1156  ;;  %760 = vst [vmem:[%s1608_s11 + $0x28] sm:$0xff] %v1155_v49 }
 0x265   : > { %v1159_v51 = vpop.eup %1158  ;;  %v721_v52 = vadd.f32 1.0, %v1157_v50 }
 0x266   : > { %v1161_v53 = vpop.eup %1160  ;;  %v719_v54 = vadd.f32 1.0, %v1159_v51 }
 0x267   : > { %v1163_v55 = vpop.eup %1162  ;;  %1172 = vrcp.f32 %v721_v52  ;;  %v722_v56 = vadd.f32 1.0, %v1161_v53 }
 0x268   : > { %1174 = vrcp.f32 %v719_v54  ;;  %v720_v57 = vadd.f32 1.0, %v1163_v55 }
 0x269   : > { %v1165_v58 = vpop.eup %1164  ;;  %1176 = vrcp.f32 %v722_v56 }
 0x26a   : > { %v1167_v59 = vpop.eup %1166  ;;  %765 = vst [vmem:[%s1608_s11 + $0x50] sm:$0xff] %v1165_v58  ;;  %1178 = vrcp.f32 %v720_v57 }
 0x26b   : > { %v1169_v60 = vpop.eup %1168  ;;  %763 = vst [vmem:[%s1608_s11 + $0x40] sm:$0xff] %v1167_v59 }
 0x26c   : > { %v1171_v61 = vpop.eup %1170  ;;  %766 = vst [vmem:[%s1608_s11 + $0x58] sm:$0xff] %v1169_v60 }
 0x26d   : > { %764 = vst [vmem:[%s1608_s11 + $0x48] sm:$0xff] %v1171_v61 }
 0x271   : > { %v1173_v62 = vpop.eup %1172 }
 0x272   : > { %v1175_v63 = vpop.eup %1174  ;;  %769 = vst [vmem:[%s1608_s11 + $0x70] sm:$0xff] %v1173_v62 }
 0x273   : > { %v1177_v0 = vpop.eup %1176  ;;  %767 = vst [vmem:[%s1608_s11 + $0x60] sm:$0xff] %v1175_v63 }
 0x274   : > { %v1179_v1 = vpop.eup %1178  ;;  %770 = vst [vmem:[%s1608_s11 + $0x78] sm:$0xff] %v1177_v0 }
 0x275   : > { %768 = vst [vmem:[%s1608_s11 + $0x68] sm:$0xff] %v1179_v1 }
 0x276   : > { %1279 = shalt.err (!%p1276_p2)
}
 0x277   : > { %s1280_s6 = scalar_lea.hbm %s1628_s9, 2048  ;;  %s1284_s8 = scalar_lea.hbm %s1682_s5, 4096 }
 0x278   : > { %p1281_p13 = scmp.ne.s32.totalorder %s1628_s9, %s1280_s6  ;;  %p1285_p4 = scmp.lt.u32.totalorder %s1628_s9, %s1682_s5 }
 0x279   : > { %p1286_p5 = scmp.lt.u32.totalorder %s1284_s8, %s1280_s6  ;;  %p1288_p11 = scmp.lt.u32.totalorder %s1280_s6, %s1628_s9 }
 0x27a   : > { %p1282_p6 = pnand %p1281_p13, %p1696_p0 }
 0x27b   : > { %p1287_p8 = por %p1286_p5, %p1285_p4 }
 0x27c   : > { %p1283_p10 = pneg %p1282_p6 }
 0x27d   : > { %p1289_p1 = por %p1288_p11, %p1287_p8 }
 0x27f   : > { %p1290_p3 = pnand %p1289_p1, %p1283_p10 }
 0x281   : > { %1293 = shalt.err (!%p1290_p3)
}
 0x282   : > { %s1346_s28 = smov 128   ;;  %s1347_s15 = smov 8  }
 0x283   : > { %1037 = dma.vmem_to_hbm [thread:$0]  (%p1696_p0), %s1630_s30, 2048, %s1628_s9, %s772_s22, %s1346_s28, %s1346_s28, %s1347_s15  }
 0x284 PF: > { %s800_s16 = sand.u32 1, %s1324_s18   ;;  %p1697_p7 = scmp.ne.s32.totalorder %s1687_s25, 0 }
 0x285   : > { %p1698_p9 = scmp.ge.s32.totalorder %s1336_s21, 2  ;;  %s801_s12 = scalar_lea.sflag [#allocation4], %s800_s16 }
 0x287   : > { %p1051_p12 = pnand %p1698_p9, %p1697_p7 }
 0x289   : > { %1319 = dma.done.wait (!%p1051_p12), %s801_s12, 2048  }
 0x28a   : > { %1321 = vsyncadd (!%p1051_p12), %s801_s12, 4294965248  ;;  %p19_p2 = scmp.ge.s32.totalorder %s1488_s14, 4   ;;  %s1699_s18 = smov %s1328_s19 }
 0x28b   : > { %s1700_s19 = smov %s1332_s20  ;;  %s1701_s20 = smov %s1504_s27 }
 0x28c   : > { %s1702_s21 = smov %s1488_s14  ;;  %21 = sbr.rel (!%p19_p2) target bundleno = 6 (0x6), region = 93 }
 0x293   :  { %806 = vsyncpa [#allocation3], 1 }
 0x294   :  { %808 = vsyncpa [#allocation3 + $0x1], 1 }
 0x295   :  { %809 = vsyncpa [#allocation6], 1 }
 0x296   :  { %810 = vsyncpa [#allocation4], 1 }
 0x297   :  { %812 = vsyncpa [#allocation4 + $0x1], 1 }

</bundles_post_ra>
